<compile_context>
chip_gen: v5e
topology: v5e:2x2
jax: 0.10.0
libtpu: 0.0.40
codegen_flags: <defaults>
</compile_context>

<pallas_src>
import jax
import jax.numpy as jnp
from jax.experimental import pallas as pl
from jax.experimental.pallas import tpu as pltpu


# ----------------------------- Pallas kernel ---------------------------------
def denoiser_kernel(c_out_ref,                                  # SMEM [B] f32
                    x_ref, w1p_ref, ht_ref, w2t_ref, b2_ref,    # VMEM tiles
                    o_ref):
    b = pl.program_id(0)
    c_out = c_out_ref[b]

    x = x_ref[0].astype(jnp.float32)                 # [C, tS]  channels on sublanes

    # synthetic eps model, channels-on-sublane form (c_in pre-folded into W1'):
    #   h   = W1'[b] @ x + h_t[b]      -> [Hd, tS]
    #   eps = W2^T @ gelu(h) + b2      -> [C,  tS]
    h = jnp.dot(w1p_ref[0], x, preferred_element_type=jnp.float32) + ht_ref[0]
    h = jax.nn.gelu(h, approximate=True)
    eps = jnp.dot(w2t_ref[...], h, preferred_element_type=jnp.float32) + b2_ref[...]

    o_ref[0] = (x + eps * c_out).astype(o_ref.dtype)  # input + eps * c_out


def denoiser_forward_pallas(x_bcs, c_out, w1p, h_t, w2t, b2, *, max_tile=8192):
    """x_bcs: [B, C, S] (NCHW with spatial flattened onto the lane axis)."""
    B, C, S = x_bcs.shape
    Hd = w1p.shape[1]

    LANE = 128
    S_pad = pl.cdiv(S, LANE) * LANE            # lane-align spatial
    tile_s = min(S_pad, max_tile)              # big lane-dense tiles (HBM-bound op)
    S_pad = pl.cdiv(S_pad, tile_s) * tile_s    # no dropped spatial tail
    if S_pad != S:
        x_bcs = jnp.pad(x_bcs, ((0, 0), (0, 0), (0, S_pad - S)))

    grid = (B, S_pad // tile_s)

    out = pl.pallas_call(
        denoiser_kernel,
        out_shape=jax.ShapeDtypeStruct((B, C, S_pad), x_bcs.dtype),
        grid=grid,
        in_specs=[
            pl.BlockSpec(memory_space=pltpu.MemorySpace.SMEM),        # c_out [B]
            pl.BlockSpec((1, C, tile_s), lambda b, s: (b, 0, s)),     # x     [B,C,S]
            pl.BlockSpec((1, Hd, C),     lambda b, s: (b, 0, 0)),     # W1'   [B,Hd,C]
            pl.BlockSpec((1, Hd, 1),     lambda b, s: (b, 0, 0)),     # h_t   [B,Hd,1]
            pl.BlockSpec((C, Hd),        lambda b, s: (0, 0)),        # W2^T  [C,Hd]
            pl.BlockSpec((C, 1),         lambda b, s: (0, 0)),        # b2    [C,1]
        ],
        out_specs=pl.BlockSpec((1, C, tile_s), lambda b, s: (b, 0, s)),
        compiler_params=pltpu.CompilerParams(
            dimension_semantics=("parallel", "parallel")),
    )(c_out, x_bcs, w1p, h_t, w2t, b2)

    return out[:, :, :S] if S_pad != S else out


# ------------------------------ JAX glue --------------------------------------
def make_schedule(n_steps=1000):
    """Deterministic DDPM schedule -> sigmas / log_sigmas (as in DiscreteSchedule)."""
    betas = jnp.linspace(1e-4, 2e-2, n_steps, dtype=jnp.float32)
    alphas_cumprod = jnp.cumprod(1.0 - betas)
    sigmas = jnp.sqrt((1.0 - alphas_cumprod) / alphas_cumprod)
    return sigmas, jnp.log(sigmas)


def sigma_to_t_quantized(sigma, log_sigmas):
    # quantize=True path: argmin_i |log(sigma) - log_sigmas[i]|
    dists = jnp.log(sigma)[None, :] - log_sigmas[:, None]
    return jnp.argmin(jnp.abs(dists), axis=0)


def timestep_embedding(t, dim):
    half = dim // 2
    freqs = jnp.exp(-jnp.log(10000.0) * jnp.arange(half, dtype=jnp.float32) / half)
    args = t.astype(jnp.float32)[:, None] * freqs[None, :]
    return jnp.concatenate([jnp.cos(args), jnp.sin(args)], axis=-1)   # [B, dim]


class DiscreteEpsDDPMDenoiserPallas:
    """Synthetic-inner-model version of DiscreteEpsDDPMDenoiser (sigma_data = 1.0)."""

    def __init__(self, key, channels=4, hidden=32, emb_dim=16, n_steps=1000):
        self.sigma_data = 1.0
        self.C, self.Hd, self.E = channels, hidden, emb_dim
        self.sigmas, self.log_sigmas = make_schedule(n_steps)
        k1, k2, k3 = jax.random.split(key, 3)
        # deterministic synthetic inner-model params
        self.W1 = jax.random.normal(k1, (channels, hidden), jnp.float32) * 0.2
        self.W2 = jax.random.normal(k2, (hidden, channels), jnp.float32) * 0.2
        self.Wt = jax.random.normal(k3, (emb_dim, hidden), jnp.float32) * 0.1
        self.b1 = jnp.zeros((hidden,), jnp.float32)
        self.b2 = jnp.zeros((channels,), jnp.float32)

    def _prep(self, sigma):
        c_out = -sigma
        c_in = 1.0 / jnp.sqrt(sigma ** 2 + self.sigma_data ** 2)
        t = sigma_to_t_quantized(sigma, self.log_sigmas)
        h_t = timestep_embedding(t, self.E) @ self.Wt + self.b1          # [B, Hd]
        return c_in.astype(jnp.float32), c_out.astype(jnp.float32), h_t

    def forward(self, x_nchw, sigma):
        B, C, H, W = x_nchw.shape
        c_in, c_out, h_t = self._prep(sigma)
        # NCHW-native: spatial flattened onto the lane axis, no transposes.
        x_bcs = x_nchw.reshape(B, C, H * W)
        # fold c_in into a per-batch W1' (tiny: B*Hd*C floats)
        w1p = c_in[:, None, None] * jnp.transpose(self.W1)[None, :, :]   # [B, Hd, C]
        out_bcs = denoiser_forward_pallas(
            x_bcs, c_out, w1p, h_t[:, :, None],
            jnp.transpose(self.W2), self.b2[:, None])
        return out_bcs.reshape(B, C, H, W)

    def forward_ref(self, x_nchw, sigma):
        # pure-JAX reference (channels-last formulation) for verification
        B, C, H, W = x_nchw.shape
        c_in, c_out, h_t = self._prep(sigma)
        x = jnp.transpose(x_nchw, (0, 2, 3, 1)).reshape(B, H * W, C)
        xs = x * c_in[:, None, None]
        h = jax.nn.gelu(xs @ self.W1 + h_t[:, None, :], approximate=True)
        eps = h @ self.W2 + self.b2[None, None, :]
        out = x + eps * c_out[:, None, None]
        return jnp.transpose(out.reshape(B, H, W, C), (0, 3, 1, 2))


# -------------------------------- demo ----------------------------------------
if __name__ == "__main__":
    key = jax.random.PRNGKey(0)
    k_model, k_x, k_sig = jax.random.split(key, 3)

    denoiser = DiscreteEpsDDPMDenoiserPallas(k_model, channels=4, hidden=32)

    B, C, H, W = 2, 4, 16, 16
    x = jax.random.normal(k_x, (B, C, H, W), jnp.float32)          # NCHW, like PyTorch
    # per-batch sigmas drawn from the discrete schedule range
    sigma = jnp.array([denoiser.sigmas[100], denoiser.sigmas[700]], jnp.float32)

    out = denoiser.forward(x, sigma)
    jax.block_until_ready(out)

    ref = denoiser.forward_ref(x, sigma)
    assert out.shape == (B, C, H, W)
    assert jnp.allclose(out, ref, atol=1e-4, rtol=1e-4), "mismatch vs reference"

    print("KERNEL_OK")
</pallas_src>

<mosaic_0001>
module attributes {stable_mosaic.version = 11 : i64} {
  func.func @denoiser_kernel(%arg0: i32, %arg1: i32, %arg2: memref<2xf32, #tpu.memory_space<smem>>, %arg3: memref<1x4x256xf32, #tpu.memory_space<vmem>>, %arg4: memref<1x32x4xf32, #tpu.memory_space<vmem>>, %arg5: memref<1x32x1xf32, #tpu.memory_space<vmem>>, %arg6: memref<4x32xf32, #tpu.memory_space<vmem>>, %arg7: memref<4x1xf32, #tpu.memory_space<vmem>>, %arg8: memref<1x4x256xf32, #tpu.memory_space<vmem>>) attributes {dimension_semantics = [#tpu.dimension_semantics<parallel>, #tpu.dimension_semantics<parallel>], iteration_bounds = array<i64: 2, 1>, scalar_prefetch = 0 : i64, scratch_operands = 0 : i64, tpu.core_type = #tpu.core_type<tc>, window_params = [{transform_indices = @transform_0, window_bounds = array<i64: 2>}, {transform_indices = @transform_1, window_bounds = array<i64: 1, 4, 256>}, {transform_indices = @transform_2, window_bounds = array<i64: 1, 32, 4>}, {transform_indices = @transform_3, window_bounds = array<i64: 1, 32, 1>}, {pipeline_mode = #tpu.pipeline_mode<synchronous>, transform_indices = @transform_4, window_bounds = array<i64: 4, 32>}, {pipeline_mode = #tpu.pipeline_mode<synchronous>, transform_indices = @transform_5, window_bounds = array<i64: 4, 1>}, {transform_indices = @transform_6, window_bounds = array<i64: 1, 4, 256>}]} {
    %0 = arith.index_cast %arg0 : i32 to index
    %1 = memref.load %arg2[%0] : memref<2xf32, #tpu.memory_space<smem>>
    %c0 = arith.constant 0 : index
    %c0_0 = arith.constant 0 : index
    %c0_1 = arith.constant 0 : index
    %2 = vector.load %arg3[%c0, %c0_0, %c0_1] : memref<1x4x256xf32, #tpu.memory_space<vmem>>, vector<1x4x256xf32>
    %3 = vector.shape_cast %2 : vector<1x4x256xf32> to vector<4x256xf32>
    %c0_2 = arith.constant 0 : index
    %c0_3 = arith.constant 0 : index
    %c0_4 = arith.constant 0 : index
    %4 = vector.load %arg4[%c0_2, %c0_3, %c0_4] : memref<1x32x4xf32, #tpu.memory_space<vmem>>, vector<1x32x4xf32>
    %5 = vector.shape_cast %4 : vector<1x32x4xf32> to vector<32x4xf32>
    %cst = arith.constant dense<0.000000e+00> : vector<32x256xf32>
    %6 = tpu.matmul %5, %3, %cst {dimension_numbers = #tpu.dot_dimension_numbers<[1], [0], [0], [1], [0, 0, 1, 1], [], []>} : vector<32x4xf32>, vector<4x256xf32>, vector<32x256xf32> -> vector<32x256xf32>
    %c0_5 = arith.constant 0 : index
    %c0_6 = arith.constant 0 : index
    %c0_7 = arith.constant 0 : index
    %7 = vector.load %arg5[%c0_5, %c0_6, %c0_7] : memref<1x32x1xf32, #tpu.memory_space<vmem>>, vector<1x32x1xf32>
    %8 = vector.shape_cast %7 : vector<1x32x1xf32> to vector<32x1xf32>
    %9 = vector.broadcast %8 : vector<32x1xf32> to vector<32x256xf32>
    %10 = arith.addf %6, %9 : vector<32x256xf32>
    %11 = arith.mulf %10, %10 : vector<32x256xf32>
    %12 = arith.mulf %10, %11 : vector<32x256xf32>
    %cst_8 = arith.constant 4.471500e-02 : f32
    %13 = vector.broadcast %cst_8 : f32 to vector<32x256xf32>
    %14 = arith.mulf %13, %12 : vector<32x256xf32>
    %15 = arith.addf %10, %14 : vector<32x256xf32>
    %cst_9 = arith.constant 0.797884583 : f32
    %16 = vector.broadcast %cst_9 : f32 to vector<32x256xf32>
    %17 = arith.mulf %16, %15 : vector<32x256xf32>
    %18 = math.tanh %17 : vector<32x256xf32>
    %cst_10 = arith.constant 1.000000e+00 : f32
    %19 = vector.broadcast %cst_10 : f32 to vector<32x256xf32>
    %20 = arith.addf %19, %18 : vector<32x256xf32>
    %cst_11 = arith.constant 5.000000e-01 : f32
    %21 = vector.broadcast %cst_11 : f32 to vector<32x256xf32>
    %22 = arith.mulf %21, %20 : vector<32x256xf32>
    %23 = arith.mulf %10, %22 : vector<32x256xf32>
    %c0_12 = arith.constant 0 : index
    %c0_13 = arith.constant 0 : index
    %24 = vector.load %arg6[%c0_12, %c0_13] : memref<4x32xf32, #tpu.memory_space<vmem>>, vector<4x32xf32>
    %cst_14 = arith.constant dense<0.000000e+00> : vector<4x256xf32>
    %25 = tpu.matmul %24, %23, %cst_14 {dimension_numbers = #tpu.dot_dimension_numbers<[1], [0], [0], [1], [0, 0, 1, 1], [], []>} : vector<4x32xf32>, vector<32x256xf32>, vector<4x256xf32> -> vector<4x256xf32>
    %c0_15 = arith.constant 0 : index
    %c0_16 = arith.constant 0 : index
    %26 = vector.load %arg7[%c0_15, %c0_16] : memref<4x1xf32, #tpu.memory_space<vmem>>, vector<4x1xf32>
    %27 = vector.broadcast %26 : vector<4x1xf32> to vector<4x256xf32>
    %28 = arith.addf %25, %27 : vector<4x256xf32>
    %29 = vector.broadcast %1 : f32 to vector<4x256xf32>
    %30 = arith.mulf %28, %29 : vector<4x256xf32>
    %31 = arith.addf %3, %30 : vector<4x256xf32>
    %c0_17 = arith.constant 0 : index
    %c0_18 = arith.constant 0 : index
    %c0_19 = arith.constant 0 : index
    %32 = vector.load %arg8[%c0_17, %c0_18, %c0_19] : memref<1x4x256xf32, #tpu.memory_space<vmem>>, vector<1x4x256xf32>
    %33 = vector.shape_cast %32 : vector<1x4x256xf32> to vector<4x256xf32>
    %34 = vector.shape_cast %31 : vector<4x256xf32> to vector<1x4x256xf32>
    tpu.vector_store %arg8[%c0_17, %c0_18, %c0_19], %34 {strides = array<i32>} : memref<1x4x256xf32, #tpu.memory_space<vmem>>, vector<1x4x256xf32>,
    return
  }
  func.func @transform_0(%arg0: i32, %arg1: i32) -> i32 {
    %c0_i32 = arith.constant 0 : i32
    %c0_i32_0 = arith.constant 0 : i32
    return %c0_i32 : i32
  }
  func.func @transform_1(%arg0: i32, %arg1: i32) -> (i32, i32, i32) {
    %c0_i32 = arith.constant 0 : i32
    %c0_i32_0 = arith.constant 0 : i32
    return %arg0, %c0_i32, %arg1 : i32, i32, i32
  }
  func.func @transform_2(%arg0: i32, %arg1: i32) -> (i32, i32, i32) {
    %c0_i32 = arith.constant 0 : i32
    %c0_i32_0 = arith.constant 0 : i32
    %c0_i32_1 = arith.constant 0 : i32
    return %arg0, %c0_i32, %c0_i32_0 : i32, i32, i32
  }
  func.func @transform_3(%arg0: i32, %arg1: i32) -> (i32, i32, i32) {
    %c0_i32 = arith.constant 0 : i32
    %c0_i32_0 = arith.constant 0 : i32
    %c0_i32_1 = arith.constant 0 : i32
    return %arg0, %c0_i32, %c0_i32_0 : i32, i32, i32
  }
  func.func @transform_4(%arg0: i32, %arg1: i32) -> (i32, i32) {
    %c0_i32 = arith.constant 0 : i32
    %c0_i32_0 = arith.constant 0 : i32
    %c0_i32_1 = arith.constant 0 : i32
    return %c0_i32, %c0_i32_0 : i32, i32
  }
  func.func @transform_5(%arg0: i32, %arg1: i32) -> (i32, i32) {
    %c0_i32 = arith.constant 0 : i32
    %c0_i32_0 = arith.constant 0 : i32
    %c0_i32_1 = arith.constant 0 : i32
    return %c0_i32, %c0_i32_0 : i32, i32
  }
  func.func @transform_6(%arg0: i32, %arg1: i32) -> (i32, i32, i32) {
    %c0_i32 = arith.constant 0 : i32
    %c0_i32_0 = arith.constant 0 : i32
    return %arg0, %c0_i32, %arg1 : i32, i32, i32
  }
}

</mosaic_0001>

<bundles_post_ra>
// kernel: tpu_custom_call.1
= control target key start
LH: loop header
LB: loop body
LE: loop exit
PB: predicated region body
PF: predicated region fallthrough
CT: control target
= control target key end

     0   :  { %11 = vsyncpa [#allocation4], 0  ;;  %s1140_s0 = inlined_call_operand.vmem [shape: f32[2], index: 0, kind: input, shape index: {}]   ;;  %s1141_s1 = inlined_call_operand.vmem [shape: f32[2,4,256], index: 1, kind: input, shape index: {}]   ;;  %s1142_s2 = inlined_call_operand.vmem [shape: f32[2,32,4], index: 2, kind: input, shape index: {}]   ;;  %s1143_s3 = inlined_call_operand.vmem [shape: f32[2,32,1], index: 3, kind: input, shape index: {}]   ;;  %s1144_s4 = inlined_call_operand.vmem [shape: f32[4,32], index: 4, kind: input, shape index: {}]   ;;  %s1145_s5 = inlined_call_operand.vmem [shape: f32[4,1], index: 5, kind: input, shape index: {}]   ;;  %s1146_s6 = inlined_call_operand.hbm [shape: f32[2,4,256], index: 6, kind: output, shape index: {}]  }
   0x1   :  { %12 = vsyncpa [#allocation3], 0 }
   0x2   :  { %14 = vsyncpa [#allocation3 + $0x1], 0  ;;  %s968_s21 = smov 0   ;;  %s970_s22 = smov 0  }
   0x3   :  { %s972_s23 = smov 0   ;;  %s974_s24 = smov 0  }
   0x4   :  { %s976_s25 = smov 0   ;;  %s978_s26 = smov 0  }
   0x5 LB: > { %s709_s27 = sadd.s32 4294967295, %s929_s26   ;;  %s710_s28 = sadd.s32 4294967294, %s929_s26   ;;  %s929_s26 = sphi %s978_s26, %s20_s26   ;;  %s925_s25 = sphi %s976_s25, %s1153_s25   ;;  %s921_s24 = sphi %s974_s24, %s1152_s24   ;;  %s917_s23 = sphi %s972_s23, %s1151_s23   ;;  %s913_s22 = sphi %s970_s22, %s1150_s22   ;;  %s909_s21 = sphi %s968_s21, %s1149_s21  }
   0x6   : > { %s32_s29 = sadd.s32 1, %s925_s25  ;;  %s184_s30 = sadd.s32 1, %s917_s23 }
   0x7   : > { %p34_p0 = scmp.ge.s32.totalorder %s32_s29, 2  ;;  %p194_p1 = scmp.ne.s32.totalorder %s917_s23, %s913_s22 }
   0x8   : > { %p195_p2 = scmp.eq.s32.totalorder %s709_s27, 1  ;;  %p200_p3 = scmp.ne.s32.totalorder %s913_s22, %s909_s21 }
   0x9   : > { %s1155_s29 = smov (%p34_p0, %s32_s29), 0  ;;  %p201_p5 = scmp.eq.s32.totalorder %s710_s28, 1 }
   0xa   : > { %p1008_p4 = por %p195_p2, %p194_p1  ;;  %s179_s8 = ssub.s32 %s925_s25, %s1155_s29 }
   0xb   : > { %p711_p6 = scmp.ge.s32.totalorder %s929_s26, 1  ;;  %p182_p7 = scmp.eq.s32.totalorder %s179_s8, 0 }
   0xc   : > { %p1015_p8 = por %p201_p5, %p200_p3  ;;  %p208_p9 = scmp.lt.s32.totalorder %s929_s26, 3 }
   0xd   : > { %s1021_s10 = scalar_select %p182_p7, %s917_s23, %s184_s30  }
   0xe   : > { %p209_p10 = pnand %p711_p6, %p208_p9  ;;  %p760_p11 = scmp.eq.s32.totalorder %s709_s27, 0 }
   0xf   : > { %s220_s13 = sshll.u32 %s1140_s0, 4  ;;  %s931_s14 = smov [#allocation2]   ;;  %s221_s13 = int_to_ptr.vmem [resolvable:$true] %s220_s13 }
  0x10   : > { %p752_p12 = pneg %p209_p10  ;;  %268 = sbr.rel (%p209_p10) target bundleno = 358 (0x166), region = 44 }
  0x12   : > { %p753_p13 = pnand %p760_p11, %p752_p12 }
  0x14   : > { %755 = dma.vmem_to_smem (!%p753_p13), %s221_s13, 16, %s931_s14, [#allocation4]  }
  0x15   : > { %900 = dma.done.wait (%p760_p11), [#allocation4], 16  }
  0x16   : > { %902 = vsyncadd (%p760_p11), [#allocation4], 4294967280 }
  0x17   : > { %275 = sfence }
  0x18   : > { %p315_p0 = scmp.lt.s32.totalorder %s921_s24, 1  ;;  %v932_v0 = vmov 0   ;;  %vm382_vm0 = vcmask 1043456   ;;  %vm369_vm1 = vcmask 31744   ;;  %v518_v49 = vld [vmem:[%s1145_s5] sm:$0xf] }
  0x19   : > { %814 = vset.pattern.permute.xlu1 %v932_v0  ;;  %813 = vset.pattern.permute.xlu0 %v932_v0  ;;  %vm524_vm2 = vcmask 261120   ;;  %s335_s17 = sld [smem:[#allocation2 + %s921_s24]]  ;;  %s311_s18 = sand.u32 1, %s913_s22  }
  0x1a   : > { %s316_s15 = scalar_select %p315_p0, %s921_s24, 1  ;;  %815 = vset.pattern.permute.xlu2 %v932_v0 }
  0x1b   : > { %521 = vperm.xlu2 %815, %v518_v49  }
  0x1c   : > { %s740_s16 = sshll.u32 %s316_s15, 3  ;;  %s741_s20 = sshll.u32 %s316_s15, 5 }
  0x1d   : > { %s322_s19 = scalar_lea.vmem %s1141_s1, %s740_s16  ;;  %s333_s30 = scalar_lea.vmem %s1143_s3, %s741_s20 }
  0x1e   : > { %v1031_v1 = vld [vmem:[%s322_s19] sm:$0xff]  ;;  %v342_v2 = vld [vmem:[%s333_s30 + $0x8] sm:$0xff]  ;;  %v344_v3 = vld [vmem:[%s333_s30 + $0x18] sm:$0xff]  ;;  %s328_s12 = scalar_lea.vmem %s1142_s2, %s741_s20  ;;  %s716_s19 = sshll.u32 %s311_s18, 3 }
  0x1f   : > { %366 = vst [vmem:[#allocation1] ss:$2 sm:$0xff] %v1031_v1  ;;  %352 = vperm.xlu1 %814, %v342_v2   ;;  %362 = vperm.xlu0 %813, %v344_v3   ;;  %v337_v4 = vld [vmem:[%s328_s12] sm:$0xff]  ;;  %v340_v5 = vld [vmem:[%s328_s12 + $0x18] sm:$0xff]  ;;  %v343_v9 = vld [vmem:[%s333_s30 + $0x10] sm:$0xff]  ;;  %s743_s20 = sshll.u32 %s921_s24, 3 }
  0x20   : > { %v341_v8 = vld [vmem:[%s333_s30] sm:$0xff]  ;;  %v338_v10 = vld [vmem:[%s328_s12 + $0x8] sm:$0xff]  ;;  %v339_v11 = vld [vmem:[%s328_s12 + $0x10] sm:$0xff]  ;;  %s592_s30 = scalar_lea.hbm %s1146_s6, %s743_s20  ;;  %s313_s8 = scalar_lea.vmem [#allocation5], %s716_s19 }
  0x21   : > { %s594_s11 = sshll.u32 %s313_s8, 4  ;;  %s596_s12 = sshll.u32 %s592_s30, 4  ;;  %s595_s11 = int_to_ptr.vmem [resolvable:$true] %s594_s11  ;;  %s597_s12 = int_to_ptr.hbm [resolvable:$true] %s596_s12 }
  0x22   : > { %s579_s24 = scalar_lea.sflag [#allocation3], %s311_s18  ;;  %s861_s13 = sshra.s32 %s597_s12, 4  ;;  %s862_s13 = int_to_ptr.hbm [resolvable:$true] %s861_s13 }
  0x23   : > { %s863_s14 = scalar_lea.hbm %s862_s13, 8  ;;  %p868_p5 = scmp.lt.s32.totalorder %s862_s13, %s1146_s6 }
  0x24   : > { %p864_p1 = scmp.ne.s32.totalorder %s862_s13, %s863_s14 }
  0x26   : > { %v367_v6 = vld.sshfl [vmem:[#allocation1] sm:$0xff pattern:$0x75316420]  ;;  %v368_v7 = vld.sshfl [vmem:[#allocation1 + $0x8] sm:$0xff pattern:$0x75316420]  ;;  %p865_p2 = pnand %p864_p1, %p1008_p4 }
  0x27   : > { %723 = vmatpush.msk.msra.mxu0 %vm382_vm0, %v367_v6  ;;  %744 = vmatpush.msk.msra.mxu2 %vm382_vm0, %v367_v6 }
  0x28   : > { %728 = vmatpush.msk.msra.mxu1 %vm382_vm0, %v368_v7  ;;  %745 = vmatpush.msk.msra.mxu3 %vm382_vm0, %v368_v7  ;;  %p866_p3 = pneg %p865_p2 }
  0x29   : > { %724 = vmatmul.msk.f32.vlgmr.msra.gmra.mxu0 %vm369_vm1, %v337_v4  ;;  %727 = vmatmul.msk.f32.vlgmr.msra.gmra.mxu2 %vm369_vm1, %v340_v5 }
  0x2a   : > { %729 = vmatmul.msk.f32.vlgmr.msra.gmra.mxu1 %vm369_vm1, %v337_v4  ;;  %732 = vmatmul.msk.f32.vlgmr.msra.gmra.mxu3 %vm369_vm1, %v340_v5 }
  0x2b   : > { %347 = vperm.xlu1 %814, %v341_v8   ;;  %357 = vperm.xlu0 %813, %v343_v9  }
  0x31   : > { %725 = vmatmul.msk.f32.gmra.mxu0 %vm369_vm1, %v338_v10 }
  0x32   : > { %730 = vmatmul.msk.f32.gmra.mxu1 %vm369_vm1, %v338_v10 }
  0x39   : > { %726 = vmatmul.msk.f32.gmra.mxu0 %vm369_vm1, %v339_v11 }
  0x3a   : > { %731 = vmatmul.msk.f32.gmra.mxu1 %vm369_vm1, %v339_v11 }
  0x91   : > { %v353_v12 = vpop.permute.xlu1 %352  ;;  %v363_v18 = vpop.permute.xlu0 %362 }
  0x9d   : > { %v348_v13 = vpop.permute.xlu1 %347  ;;  %v358_v44 = vpop.permute.xlu0 %357 }
  0xa6   : > { %v404_v14 = vpop.f32.mrf.mxu0 }
  0xa7   : > { %v433_v15 = vpop.f32.mrf.mxu1  ;;  %v1052_v16 = vadd.f32 %v404_v14, %v348_v13 }
  0xa8   : > { %v1054_v17 = vadd.f32 %v433_v15, %v348_v13 }
  0xa9   : > { %v445_v20 = vmul.f32 %v1052_v16, %v1052_v16 }
  0xaa   : > { %v446_v23 = vmul.f32 %v1054_v17, %v1054_v17 }
  0xab   : > { %v453_v31 = vmul.f32 %v445_v20, %v1052_v16 }
  0xac   : > { %v413_v19 = vpop.f32.mrf.mxu2  ;;  %v454_v34 = vmul.f32 %v446_v23, %v1054_v17 }
  0xad   : > { %v1058_v21 = vadd.f32 %v413_v19, %v363_v18  ;;  %v442_v22 = vpop.f32.mrf.mxu3  ;;  %v461_v43 = vmul.f32 0.044715, %v453_v31 }
  0xae   : > { %v1062_v24 = vadd.f32 %v442_v22, %v363_v18  ;;  %v407_v25 = vpop.f32.mrf.mxu0  ;;  %v462_v48 = vmul.f32 0.044715, %v454_v34 }
  0xaf   : > { %v451_v26 = vmul.f32 %v1058_v21, %v1058_v21  ;;  %v1066_v27 = vadd.f32 %v407_v25, %v353_v12  ;;  %v436_v28 = vpop.f32.mrf.mxu1  ;;  %v469_v58 = vadd.f32 %v461_v43, %v1052_v16 }
  0xb0   : > { %v452_v29 = vmul.f32 %v1062_v24, %v1062_v24  ;;  %v1070_v30 = vadd.f32 %v436_v28, %v353_v12  ;;  %v470_v60 = vadd.f32 %v462_v48, %v1054_v17 }
  0xb1   : > { %v459_v32 = vmul.f32 %v451_v26, %v1058_v21  ;;  %v447_v33 = vmul.f32 %v1066_v27, %v1066_v27  ;;  %v477_v3 = vmul.f32 0.7978846, %v469_v58 }
  0xb2   : > { %v460_v35 = vmul.f32 %v452_v29, %v1062_v24  ;;  %v448_v36 = vmul.f32 %v1070_v30, %v1070_v30  ;;  %v478_v5 = vmul.f32 0.7978846, %v470_v60 }
  0xb3   : > { %v455_v37 = vmul.f32 %v447_v33, %v1066_v27  ;;  %v467_v38 = vmul.f32 0.044715, %v459_v32 }
  0xb4   : > { %v456_v39 = vmul.f32 %v448_v36, %v1070_v30  ;;  %v468_v40 = vmul.f32 0.044715, %v460_v35 }
  0xb5   : > { %v475_v41 = vadd.f32 %v467_v38, %v1058_v21  ;;  %v463_v42 = vmul.f32 0.044715, %v455_v37 }
  0xb6   : > { %v410_v45 = vpop.f32.mrf.mxu0  ;;  %v476_v46 = vadd.f32 %v468_v40, %v1062_v24  ;;  %v464_v47 = vmul.f32 0.044715, %v456_v39 }
  0xb7   : > { %v411_v50 = vadd.f32 %v410_v45, %v358_v44  ;;  %v439_v51 = vpop.f32.mrf.mxu1  ;;  %v483_v52 = vmul.f32 0.7978846, %v475_v41  ;;  %v471_v53 = vadd.f32 %v463_v42, %v1066_v27  ;;  %v517_v45 = vld [vmem:[%s1144_s4] sm:$0xf] }
  0xb8   : > { %v440_v54 = vadd.f32 %v439_v51, %v358_v44  ;;  %v484_v55 = vmul.f32 0.7978846, %v476_v46  ;;  %v472_v56 = vadd.f32 %v464_v47, %v1070_v30 }
  0xb9   : > { %v449_v57 = vmul.f32 %v411_v50, %v411_v50  ;;  %816 = vtanh.f32 %v483_v52  ;;  %v479_v62 = vmul.f32 0.7978846, %v471_v53 }
  0xba   : > { %v450_v59 = vmul.f32 %v440_v54, %v440_v54  ;;  %818 = vtanh.f32 %v484_v55  ;;  %v480_v0 = vmul.f32 0.7978846, %v472_v56 }
  0xbb   : > { %v457_v61 = vmul.f32 %v449_v57, %v411_v50  ;;  %820 = vtanh.f32 %v479_v62 }
  0xbc   : > { %v458_v63 = vmul.f32 %v450_v59, %v440_v54  ;;  %822 = vtanh.f32 %v480_v0 }
  0xbd   : > { %v465_v2 = vmul.f32 0.044715, %v457_v61  ;;  %824 = vtanh.f32 %v477_v3 }
  0xbe   : > { %v466_v4 = vmul.f32 0.044715, %v458_v63  ;;  %826 = vtanh.f32 %v478_v5 }
  0xbf   : > { %v817_v6 = vpop.eup %816  ;;  %v473_v7 = vadd.f32 %v465_v2, %v411_v50 }
  0xc0   : > { %v819_v8 = vpop.eup %818  ;;  %v499_v9 = vadd.f32 1.0, %v817_v6  ;;  %v474_v10 = vadd.f32 %v466_v4, %v440_v54 }
  0xc1   : > { %v500_v11 = vadd.f32 1.0, %v819_v8  ;;  %v481_v12 = vmul.f32 0.7978846, %v473_v7  ;;  %v821_v19 = vpop.eup %820 }
  0xc2   : > { %v507_v13 = vmul.f32 0.5, %v499_v9  ;;  %v482_v14 = vmul.f32 0.7978846, %v474_v10  ;;  %v823_v22 = vpop.eup %822  ;;  %v495_v26 = vadd.f32 1.0, %v821_v19 }
  0xc3   : > { %v508_v15 = vmul.f32 0.5, %v500_v11  ;;  %828 = vtanh.f32 %v481_v12  ;;  %v825_v23 = vpop.eup %824  ;;  %v496_v29 = vadd.f32 1.0, %v823_v22 }
  0xc4   : > { %v515_v18 = vmul.f32 %v507_v13, %v1058_v21  ;;  %830 = vtanh.f32 %v482_v14  ;;  %v827_v25 = vpop.eup %826  ;;  %v493_v33 = vadd.f32 1.0, %v825_v23  ;;  %v503_v37 = vmul.f32 0.5, %v495_v26 }
  0xc5   : > { %v516_v20 = vmul.f32 %v508_v15, %v1062_v24  ;;  %v494_v35 = vadd.f32 1.0, %v827_v25  ;;  %v504_v38 = vmul.f32 0.5, %v496_v29 }
  0xc6   : > { %540 = vmatpush.msrb.mxu2 %v515_v18  ;;  %v501_v40 = vmul.f32 0.5, %v493_v33  ;;  %v511_v42 = vmul.f32 %v503_v37, %v1066_v27  ;;  %v522_v27 = vpop.permute.xlu2 %521 }
  0xc7   : > { %560 = vmatpush.msrb.mxu3 %v516_v20  ;;  %v502_v41 = vmul.f32 0.5, %v494_v35  ;;  %v512_v43 = vmul.f32 %v504_v38, %v1070_v30 }
  0xc8   : > { %v509_v44 = vmul.f32 %v501_v40, %v1052_v16  ;;  %v568_v16 = vstv %s335_s17  ;;  %s867_s17 = scalar_lea.hbm %s1146_s6, 16 }
  0xc9   : > { %v829_v28 = vpop.eup %828  ;;  %v510_v46 = vmul.f32 %v502_v41, %v1054_v17  ;;  %p869_p6 = scmp.lt.s32.totalorder %s867_s17, %s863_s14 }
  0xca   : > { %v831_v31 = vpop.eup %830  ;;  %v497_v32 = vadd.f32 1.0, %v829_v28 }
  0xcb   : > { %v498_v34 = vadd.f32 1.0, %v831_v31  ;;  %p870_p7 = por %p869_p6, %p868_p5 }
  0xcc   : > { %v505_v36 = vmul.f32 0.5, %v497_v32 }
  0xcd   : > { %v506_v21 = vmul.f32 0.5, %v498_v34  ;;  %p871_p9 = pnand %p870_p7, %p866_p3 }
  0xce   : > { %v513_v39 = vmul.f32 %v505_v36, %v411_v50 }
  0xcf   : > { %v514_v24 = vmul.f32 %v506_v21, %v440_v54 }
  0xd0   : > { %541 = vmatpush.msrb.mxu2 %v513_v39 }
  0xd1   : > { %561 = vmatpush.msrb.mxu3 %v514_v24 }
  0xd2   : > { %542 = vmatpush.msrb.mxu2 %v511_v42 }
  0xd3   : > { %562 = vmatpush.msrb.mxu3 %v512_v43 }
  0xd4   : > { %543 = vmatpush.msrb.mxu2 %v509_v44 }
  0xd5   : > { %563 = vmatpush.msrb.mxu3 %v510_v46  ;;  %733 = vmatmul.msk.f32.vlgmr.msrb.gmra.mxu2 %vm524_vm2, %v517_v45 }
  0xd6   : > { %734 = vmatmul.msk.f32.vlgmr.msrb.gmra.mxu3 %vm524_vm2, %v517_v45 }
 0x158   : > { %v545_v30 = vpop.f32.mrf.mxu2 }
 0x159   : > { %v565_v47 = vpop.f32.mrf.mxu3  ;;  %v546_v49 = vadd.f32 %v545_v30, %v522_v27 }
 0x15a   : > { %v566_v48 = vadd.f32 %v565_v47, %v522_v27 }
 0x15b   : > { %v569_v51 = vmul.f32 %v568_v16, %v546_v49 }
 0x15c   : > { %v570_v50 = vmul.f32 %v568_v16, %v566_v48 }
 0x15e   : > { %v573_v17 = vrot.slane %v570_v50, 4 }
 0x160   : > { %v574_v52 = vsel %vm382_vm0, %v569_v51, %v573_v17 }
 0x161   : > { %v576_v53 = vadd.f32 %v574_v52, %v1031_v1 }
 0x163   : > { %577 = vst [vmem:[%s313_s8] sm:$0xff] %v576_v53 }
 0x164   : > { %874 = shalt.err (!%p871_p9)
}
 0x165   : > { %750 = dma.vmem_to_hbm [thread:$0]  (%p1008_p4), %s595_s11, 128, %s597_s12, %s579_s24  }
 0x166 PF: > { %p762_p10 = scmp.ge.s32.totalorder %s929_s26, 2  ;;  %s608_s18 = sand.u32 1, %s909_s21  }
 0x167   : > { %s609_s27 = scalar_lea.sflag [#allocation3], %s608_s18 }
 0x168   : > { %p757_p11 = pnand %p762_p10, %p1015_p8 }
 0x16a   : > { %p758_p12 = pneg %p757_p11 }
 0x16c   : > { %904 = dma.done.wait (%p758_p12), %s609_s27, 128  }
 0x16d   : > { %906 = vsyncadd (%p758_p12), %s609_s27, 4294967168  ;;  %s20_s26 = sadd.s32 1, %s929_s26   ;;  %s1149_s21 = smov %s913_s22 }
 0x16e   : > { %p17_p13 = scmp.ge.s32.totalorder %s20_s26, 4   ;;  %s1150_s22 = smov %s917_s23 }
 0x16f   : > { %s1151_s23 = smov %s1021_s10  ;;  %s1152_s24 = smov %s925_s25 }
 0x170   : > { %s1153_s25 = smov %s1155_s29  ;;  %19 = sbr.rel (!%p17_p13) target bundleno = 5 (0x5), region = 90 }
 0x175   :  { %615 = vsyncpa [#allocation3], 1 }
 0x176   :  { %617 = vsyncpa [#allocation3 + $0x1], 1 }
 0x177   :  { %618 = vsyncpa [#allocation4], 1 }
 0x178   :  { %620 = vsyncpa [#allocation4 + $0x1], 1 }

</bundles_post_ra>
